<compile_context>
chip_gen: v6e
topology: v6e:2x2x1
jax: 0.10.0
libtpu: 0.0.40
codegen_flags: <defaults>
</compile_context>

<pallas_src>
import jax
import jax.numpy as jnp
from jax.experimental import pallas as pl
from jax.experimental.pallas import tpu as pltpu

_EPS = 1e-8  # PyTorch nn.CosineSimilarity default eps


def _cdiv(a, b):
    return -(-a // b)


def _round_up(x, m):
    return ((x + m - 1) // m) * m


def _make_triplet_kernel(margin, batch, block_rows, pack, feat_dim, needs_mask):
    """batch:      true logical batch size B.
    block_rows: packed rows processed per grid step.
    pack:       logical rows per packed row (128 // D when lane-packed, else 1).
    feat_dim:   logical embedding dim D.
    needs_mask: True iff a partial trailing tile exists (trace-time toggle)."""

    def triplet_kernel(a_ref, p_ref, n_ref, out_ref):
        i = pl.program_id(0)

        # f32 upcast in-kernel so bf16 can be fed straight from HBM (fast path).
        a = a_ref[...].astype(jnp.float32)
        p = p_ref[...].astype(jnp.float32)
        n = n_ref[...].astype(jnp.float32)

        if pack > 1:
            # Exact segmented lane reduction: each packed row holds `pack`
            # logical rows of `feat_dim` lanes each.  Static lane slices +
            # per-segment sums, then concatenate into a (TB, pack) result.
            def row_sum(x):
                parts = [
                    jnp.sum(x[:, s * feat_dim:(s + 1) * feat_dim],
                            axis=-1, keepdims=True)
                    for s in range(pack)
                ]
                return jnp.concatenate(parts, axis=-1)
        else:
            def row_sum(x):
                return jnp.sum(x, axis=-1, keepdims=True)

        dot_ap = row_sum(a * p)
        dot_an = row_sum(a * n)
        sum_aa = row_sum(a * a)
        sum_pp = row_sum(p * p)
        sum_nn = row_sum(n * n)

        # 1 / max(||x||, eps) == rsqrt(max(||x||^2, eps^2))  (sqrt is monotone)
        inv_a = jax.lax.rsqrt(jnp.maximum(sum_aa, _EPS * _EPS))
        inv_p = jax.lax.rsqrt(jnp.maximum(sum_pp, _EPS * _EPS))
        inv_n = jax.lax.rsqrt(jnp.maximum(sum_nn, _EPS * _EPS))

        cos_pos = dot_ap * inv_a * inv_p
        cos_neg = dot_an * inv_a * inv_n

        # ReLU(margin - cos_pos + cos_neg), shape (TB, pack)
        losses = jnp.maximum(margin - cos_pos + cos_neg, 0.0)

        if needs_mask:
            # Mask logical rows past the true batch (padded trailing tile).
            # Pure VPU filler under a memory-bound regime; only emitted when a
            # partial tile exists.
            r_ids = jax.lax.broadcasted_iota(jnp.int32, losses.shape, 0)
            s_ids = jax.lax.broadcasted_iota(jnp.int32, losses.shape, 1)
            logical = (i * block_rows + r_ids) * pack + s_ids
            losses = jnp.where(logical < batch, losses, 0.0)

        # Per-tile partial sum, broadcast into a lane-dense output tile
        # (unmasked vector stores; final mean done in the wrapper).
        tile_sum = jnp.sum(losses)
        out_ref[...] = jnp.full(out_ref.shape, tile_sum, dtype=out_ref.dtype)

    return triplet_kernel


def _pick_block_rows(num_rows, lane_width, itemsize):
    """Byte-budgeted batch tile (in packed rows).

    Accounts for lane padding (round_up to 128) and the in-kernel f32 upcast /
    product temporaries, so bf16 inputs don't silently double VMEM use.
    Budget is conservative for v7x (64 MiB physical / 32 MiB scoped VMEM);
    v5e/v6e simply see larger-than-needed headroom."""
    itemsize = max(int(itemsize), 1)
    sub = max(8, 32 // itemsize)          # sublane multiple: 8 f32 / 16 bf16 / 32 int8
    if num_rows <= sub:
        return num_rows                   # single tile equal to the full array
    lanes = _round_up(lane_width, 128)
    # Per packed row, per grid step:
    #   pipelined inputs: 3 arrays x 2 double-buffers, lane-padded, native dtype
    #   in-kernel f32 temporaries: ~6 live (TB, lanes) f32 arrays (upcasts + products)
    per_row = 3 * 2 * lanes * itemsize + 6 * lanes * 4
    budget = 14 * 1024 * 1024
    tb = max(sub, (budget // per_row) // sub * sub)
    # Keep at least two grid steps so ("parallel",) can give both v7x
    # TensorCores work (near-free on v5e/v6e: one extra ~0.35us step).
    tb = min(tb, _round_up(_cdiv(num_rows, 2), sub))
    return max(sub, tb)


def triplet_loss(anchor, positive, negative, margin, *, block_rows=None):
    """anchor/positive/negative: (B, D) arrays (f32 or bf16; bf16 is the fast
    path -- do NOT pre-upcast in the wrapper).  Returns scalar f32 loss.
    `block_rows` (expert knob) is in *packed* rows when lane packing applies."""
    assert anchor.shape == positive.shape == negative.shape
    assert anchor.ndim == 2
    B, D = anchor.shape

    # Lane packing for narrow embeddings: view (B, D) as (B/pack, pack*D).
    # Free row-major reshape -> lane-dense VMEM tiles and denser DMA rows.
    if D < 128 and 128 % D == 0 and B % (128 // D) == 0:
        pack = 128 // D
    else:
        pack = 1  # TODO(synk): pad ragged batches to a multiple of 128//D to lane-pack them too.
    R = B // pack
    L = D * pack

    a2 = anchor.reshape(R, L)
    p2 = positive.reshape(R, L)
    n2 = negative.reshape(R, L)

    if block_rows is None:
        block_rows = _pick_block_rows(R, L, anchor.dtype.itemsize)
    block_rows = int(block_rows)
    num_tiles = _cdiv(R, block_rows)
    needs_mask = (R % block_rows) != 0

    kernel = _make_triplet_kernel(float(margin), B, block_rows, pack, D, needs_mask)

    in_spec = pl.BlockSpec((block_rows, L), lambda i: (i, 0))
    partials = pl.pallas_call(
        kernel,
        out_shape=jax.ShapeDtypeStruct((num_tiles, 8, 128), jnp.float32),
        grid_spec=pltpu.PrefetchScalarGridSpec(
            num_scalar_prefetch=0,
            grid=(num_tiles,),
            in_specs=[in_spec, in_spec, in_spec],
            out_specs=pl.BlockSpec((1, 8, 128), lambda i: (i, 0, 0)),
        ),
        compiler_params=pltpu.CompilerParams(
            dimension_semantics=("parallel",),
            vmem_limit_bytes=48 * 1024 * 1024,
        ),
    )(a2, p2, n2)

    # Each tile's (8,128) block holds that tile's partial sum; take one lane
    # per tile, sum over tiles, divide by the true batch size.
    return jnp.sum(partials[:, 0, 0]) / B


def triplet_loss_ref(anchor, positive, negative, margin):
    """Pure-JAX reference matching the PyTorch module."""
    def cos(x1, x2):
        dot = jnp.sum(x1 * x2, axis=-1)
        n1 = jnp.linalg.norm(x1, axis=-1)
        n2 = jnp.linalg.norm(x2, axis=-1)
        return dot / (jnp.maximum(n1, _EPS) * jnp.maximum(n2, _EPS))

    losses = jax.nn.relu(margin - cos(anchor, positive) + cos(anchor, negative))
    return jnp.mean(losses)


if __name__ == "__main__":
    margin = 0.5
    key = jax.random.PRNGKey(0)

    def make_inputs(k, B, D, dtype):
        k1, k2, k3 = jax.random.split(k, 3)
        a = jax.random.normal(k1, (B, D), dtype=jnp.float32).astype(dtype)
        p = jax.random.normal(k2, (B, D), dtype=jnp.float32).astype(dtype)
        n = jax.random.normal(k3, (B, D), dtype=jnp.float32).astype(dtype)
        return a, p, n

    # (B, D, dtype, block_rows_override)
    cases = [
        (256, 32, jnp.float32, None),   # lane-packed (pack=4), auto tile, 2 tiles
        (40, 32, jnp.float32, 8),       # lane-packed, partial trailing tile (mask path)
        (24, 48, jnp.float32, None),    # pack=1 fallback (D does not divide 128) + mask
        (128, 32, jnp.bfloat16, None),  # bf16 fast path (in-kernel f32 upcast)
    ]
    for idx, (B, D, dtype, br) in enumerate(cases):
        key, sub = jax.random.split(key)
        a, p, n = make_inputs(sub, B, D, dtype)
        loss = triplet_loss(a, p, n, margin, block_rows=br)
        jax.block_until_ready(loss)
        ref = triplet_loss_ref(
            a.astype(jnp.float32), p.astype(jnp.float32), n.astype(jnp.float32), margin
        )
        assert jnp.allclose(loss, ref, atol=1e-4, rtol=1e-4), (idx, loss, ref)

    print("KERNEL_OK")
</pallas_src>

<mosaic_0001>
module attributes {stable_mosaic.version = 11 : i64} {
  func.func @triplet_kernel(%arg0: i32, %arg1: memref<32x128xf32, #tpu.memory_space<vmem>>, %arg2: memref<32x128xf32, #tpu.memory_space<vmem>>, %arg3: memref<32x128xf32, #tpu.memory_space<vmem>>, %arg4: memref<1x8x128xf32, #tpu.memory_space<vmem>>) attributes {dimension_semantics = [#tpu.dimension_semantics<parallel>], iteration_bounds = array<i64: 2>, scalar_prefetch = 0 : i64, scratch_operands = 0 : i64, tpu.core_type = #tpu.core_type<tc>, window_params = [{transform_indices = @transform_0, window_bounds = array<i64: 32, 128>}, {transform_indices = @transform_1, window_bounds = array<i64: 32, 128>}, {transform_indices = @transform_2, window_bounds = array<i64: 32, 128>}, {transform_indices = @transform_3, window_bounds = array<i64: 1, 8, 128>}]} {
    %c0 = arith.constant 0 : index
    %c0_0 = arith.constant 0 : index
    %0 = vector.load %arg1[%c0, %c0_0] : memref<32x128xf32, #tpu.memory_space<vmem>>, vector<32x128xf32>
    %c0_1 = arith.constant 0 : index
    %c0_2 = arith.constant 0 : index
    %1 = vector.load %arg2[%c0_1, %c0_2] : memref<32x128xf32, #tpu.memory_space<vmem>>, vector<32x128xf32>
    %c0_3 = arith.constant 0 : index
    %c0_4 = arith.constant 0 : index
    %2 = vector.load %arg3[%c0_3, %c0_4] : memref<32x128xf32, #tpu.memory_space<vmem>>, vector<32x128xf32>
    %3 = arith.mulf %0, %1 : vector<32x128xf32>
    %4 = vector.extract_strided_slice %3 {offsets = [0, 0], sizes = [32, 32], strides = [1, 1]} : vector<32x128xf32> to vector<32x32xf32>
    %cst = arith.constant dense<0.000000e+00> : vector<32xf32>
    %5 = vector.multi_reduction <add>, %4, %cst [1] : vector<32x32xf32> to vector<32xf32>
    %6 = vector.shape_cast %5 : vector<32xf32> to vector<32x1xf32>
    %7 = vector.extract_strided_slice %3 {offsets = [0, 32], sizes = [32, 32], strides = [1, 1]} : vector<32x128xf32> to vector<32x32xf32>
    %cst_5 = arith.constant dense<0.000000e+00> : vector<32xf32>
    %8 = vector.multi_reduction <add>, %7, %cst_5 [1] : vector<32x32xf32> to vector<32xf32>
    %9 = vector.shape_cast %8 : vector<32xf32> to vector<32x1xf32>
    %10 = vector.extract_strided_slice %3 {offsets = [0, 64], sizes = [32, 32], strides = [1, 1]} : vector<32x128xf32> to vector<32x32xf32>
    %cst_6 = arith.constant dense<0.000000e+00> : vector<32xf32>
    %11 = vector.multi_reduction <add>, %10, %cst_6 [1] : vector<32x32xf32> to vector<32xf32>
    %12 = vector.shape_cast %11 : vector<32xf32> to vector<32x1xf32>
    %13 = vector.extract_strided_slice %3 {offsets = [0, 96], sizes = [32, 32], strides = [1, 1]} : vector<32x128xf32> to vector<32x32xf32>
    %cst_7 = arith.constant dense<0.000000e+00> : vector<32xf32>
    %14 = vector.multi_reduction <add>, %13, %cst_7 [1] : vector<32x32xf32> to vector<32xf32>
    %15 = vector.shape_cast %14 : vector<32xf32> to vector<32x1xf32>
    %16 = tpu.concatenate %6, %9, %12, %15 in 1 : vector<32x1xf32>, vector<32x1xf32>, vector<32x1xf32>, vector<32x1xf32> -> vector<32x4xf32>
    %17 = arith.mulf %0, %2 : vector<32x128xf32>
    %18 = vector.extract_strided_slice %17 {offsets = [0, 0], sizes = [32, 32], strides = [1, 1]} : vector<32x128xf32> to vector<32x32xf32>
    %cst_8 = arith.constant dense<0.000000e+00> : vector<32xf32>
    %19 = vector.multi_reduction <add>, %18, %cst_8 [1] : vector<32x32xf32> to vector<32xf32>
    %20 = vector.shape_cast %19 : vector<32xf32> to vector<32x1xf32>
    %21 = vector.extract_strided_slice %17 {offsets = [0, 32], sizes = [32, 32], strides = [1, 1]} : vector<32x128xf32> to vector<32x32xf32>
    %cst_9 = arith.constant dense<0.000000e+00> : vector<32xf32>
    %22 = vector.multi_reduction <add>, %21, %cst_9 [1] : vector<32x32xf32> to vector<32xf32>
    %23 = vector.shape_cast %22 : vector<32xf32> to vector<32x1xf32>
    %24 = vector.extract_strided_slice %17 {offsets = [0, 64], sizes = [32, 32], strides = [1, 1]} : vector<32x128xf32> to vector<32x32xf32>
    %cst_10 = arith.constant dense<0.000000e+00> : vector<32xf32>
    %25 = vector.multi_reduction <add>, %24, %cst_10 [1] : vector<32x32xf32> to vector<32xf32>
    %26 = vector.shape_cast %25 : vector<32xf32> to vector<32x1xf32>
    %27 = vector.extract_strided_slice %17 {offsets = [0, 96], sizes = [32, 32], strides = [1, 1]} : vector<32x128xf32> to vector<32x32xf32>
    %cst_11 = arith.constant dense<0.000000e+00> : vector<32xf32>
    %28 = vector.multi_reduction <add>, %27, %cst_11 [1] : vector<32x32xf32> to vector<32xf32>
    %29 = vector.shape_cast %28 : vector<32xf32> to vector<32x1xf32>
    %30 = tpu.concatenate %20, %23, %26, %29 in 1 : vector<32x1xf32>, vector<32x1xf32>, vector<32x1xf32>, vector<32x1xf32> -> vector<32x4xf32>
    %31 = arith.mulf %0, %0 : vector<32x128xf32>
    %32 = vector.extract_strided_slice %31 {offsets = [0, 0], sizes = [32, 32], strides = [1, 1]} : vector<32x128xf32> to vector<32x32xf32>
    %cst_12 = arith.constant dense<0.000000e+00> : vector<32xf32>
    %33 = vector.multi_reduction <add>, %32, %cst_12 [1] : vector<32x32xf32> to vector<32xf32>
    %34 = vector.shape_cast %33 : vector<32xf32> to vector<32x1xf32>
    %35 = vector.extract_strided_slice %31 {offsets = [0, 32], sizes = [32, 32], strides = [1, 1]} : vector<32x128xf32> to vector<32x32xf32>
    %cst_13 = arith.constant dense<0.000000e+00> : vector<32xf32>
    %36 = vector.multi_reduction <add>, %35, %cst_13 [1] : vector<32x32xf32> to vector<32xf32>
    %37 = vector.shape_cast %36 : vector<32xf32> to vector<32x1xf32>
    %38 = vector.extract_strided_slice %31 {offsets = [0, 64], sizes = [32, 32], strides = [1, 1]} : vector<32x128xf32> to vector<32x32xf32>
    %cst_14 = arith.constant dense<0.000000e+00> : vector<32xf32>
    %39 = vector.multi_reduction <add>, %38, %cst_14 [1] : vector<32x32xf32> to vector<32xf32>
    %40 = vector.shape_cast %39 : vector<32xf32> to vector<32x1xf32>
    %41 = vector.extract_strided_slice %31 {offsets = [0, 96], sizes = [32, 32], strides = [1, 1]} : vector<32x128xf32> to vector<32x32xf32>
    %cst_15 = arith.constant dense<0.000000e+00> : vector<32xf32>
    %42 = vector.multi_reduction <add>, %41, %cst_15 [1] : vector<32x32xf32> to vector<32xf32>
    %43 = vector.shape_cast %42 : vector<32xf32> to vector<32x1xf32>
    %44 = tpu.concatenate %34, %37, %40, %43 in 1 : vector<32x1xf32>, vector<32x1xf32>, vector<32x1xf32>, vector<32x1xf32> -> vector<32x4xf32>
    %45 = arith.mulf %1, %1 : vector<32x128xf32>
    %46 = vector.extract_strided_slice %45 {offsets = [0, 0], sizes = [32, 32], strides = [1, 1]} : vector<32x128xf32> to vector<32x32xf32>
    %cst_16 = arith.constant dense<0.000000e+00> : vector<32xf32>
    %47 = vector.multi_reduction <add>, %46, %cst_16 [1] : vector<32x32xf32> to vector<32xf32>
    %48 = vector.shape_cast %47 : vector<32xf32> to vector<32x1xf32>
    %49 = vector.extract_strided_slice %45 {offsets = [0, 32], sizes = [32, 32], strides = [1, 1]} : vector<32x128xf32> to vector<32x32xf32>
    %cst_17 = arith.constant dense<0.000000e+00> : vector<32xf32>
    %50 = vector.multi_reduction <add>, %49, %cst_17 [1] : vector<32x32xf32> to vector<32xf32>
    %51 = vector.shape_cast %50 : vector<32xf32> to vector<32x1xf32>
    %52 = vector.extract_strided_slice %45 {offsets = [0, 64], sizes = [32, 32], strides = [1, 1]} : vector<32x128xf32> to vector<32x32xf32>
    %cst_18 = arith.constant dense<0.000000e+00> : vector<32xf32>
    %53 = vector.multi_reduction <add>, %52, %cst_18 [1] : vector<32x32xf32> to vector<32xf32>
    %54 = vector.shape_cast %53 : vector<32xf32> to vector<32x1xf32>
    %55 = vector.extract_strided_slice %45 {offsets = [0, 96], sizes = [32, 32], strides = [1, 1]} : vector<32x128xf32> to vector<32x32xf32>
    %cst_19 = arith.constant dense<0.000000e+00> : vector<32xf32>
    %56 = vector.multi_reduction <add>, %55, %cst_19 [1] : vector<32x32xf32> to vector<32xf32>
    %57 = vector.shape_cast %56 : vector<32xf32> to vector<32x1xf32>
    %58 = tpu.concatenate %48, %51, %54, %57 in 1 : vector<32x1xf32>, vector<32x1xf32>, vector<32x1xf32>, vector<32x1xf32> -> vector<32x4xf32>
    %59 = arith.mulf %2, %2 : vector<32x128xf32>
    %60 = vector.extract_strided_slice %59 {offsets = [0, 0], sizes = [32, 32], strides = [1, 1]} : vector<32x128xf32> to vector<32x32xf32>
    %cst_20 = arith.constant dense<0.000000e+00> : vector<32xf32>
    %61 = vector.multi_reduction <add>, %60, %cst_20 [1] : vector<32x32xf32> to vector<32xf32>
    %62 = vector.shape_cast %61 : vector<32xf32> to vector<32x1xf32>
    %63 = vector.extract_strided_slice %59 {offsets = [0, 32], sizes = [32, 32], strides = [1, 1]} : vector<32x128xf32> to vector<32x32xf32>
    %cst_21 = arith.constant dense<0.000000e+00> : vector<32xf32>
    %64 = vector.multi_reduction <add>, %63, %cst_21 [1] : vector<32x32xf32> to vector<32xf32>
    %65 = vector.shape_cast %64 : vector<32xf32> to vector<32x1xf32>
    %66 = vector.extract_strided_slice %59 {offsets = [0, 64], sizes = [32, 32], strides = [1, 1]} : vector<32x128xf32> to vector<32x32xf32>
    %cst_22 = arith.constant dense<0.000000e+00> : vector<32xf32>
    %67 = vector.multi_reduction <add>, %66, %cst_22 [1] : vector<32x32xf32> to vector<32xf32>
    %68 = vector.shape_cast %67 : vector<32xf32> to vector<32x1xf32>
    %69 = vector.extract_strided_slice %59 {offsets = [0, 96], sizes = [32, 32], strides = [1, 1]} : vector<32x128xf32> to vector<32x32xf32>
    %cst_23 = arith.constant dense<0.000000e+00> : vector<32xf32>
    %70 = vector.multi_reduction <add>, %69, %cst_23 [1] : vector<32x32xf32> to vector<32xf32>
    %71 = vector.shape_cast %70 : vector<32xf32> to vector<32x1xf32>
    %72 = tpu.concatenate %62, %65, %68, %71 in 1 : vector<32x1xf32>, vector<32x1xf32>, vector<32x1xf32>, vector<32x1xf32> -> vector<32x4xf32>
    %cst_24 = arith.constant 1.000000e-16 : f32
    %73 = vector.broadcast %cst_24 : f32 to vector<32x4xf32>
    %74 = arith.maximumf %44, %73 : vector<32x4xf32>
    %75 = math.rsqrt %74 : vector<32x4xf32>
    %cst_25 = arith.constant 1.000000e-16 : f32
    %76 = vector.broadcast %cst_25 : f32 to vector<32x4xf32>
    %77 = arith.maximumf %58, %76 : vector<32x4xf32>
    %78 = math.rsqrt %77 : vector<32x4xf32>
    %cst_26 = arith.constant 1.000000e-16 : f32
    %79 = vector.broadcast %cst_26 : f32 to vector<32x4xf32>
    %80 = arith.maximumf %72, %79 : vector<32x4xf32>
    %81 = math.rsqrt %80 : vector<32x4xf32>
    %82 = arith.mulf %16, %75 : vector<32x4xf32>
    %83 = arith.mulf %82, %78 : vector<32x4xf32>
    %84 = arith.mulf %30, %75 : vector<32x4xf32>
    %85 = arith.mulf %84, %81 : vector<32x4xf32>
    %cst_27 = arith.constant 5.000000e-01 : f32
    %86 = vector.broadcast %cst_27 : f32 to vector<32x4xf32>
    %87 = arith.subf %86, %83 : vector<32x4xf32>
    %88 = arith.addf %87, %85 : vector<32x4xf32>
    %cst_28 = arith.constant 0.000000e+00 : f32
    %89 = vector.broadcast %cst_28 : f32 to vector<32x4xf32>
    %90 = arith.maximumf %88, %89 : vector<32x4xf32>
    %91 = vector.shape_cast %90 : vector<32x4xf32> to vector<1x32x4xf32>
    %cst_29 = arith.constant dense<0.000000e+00> : vector<1xf32>
    %92 = vector.multi_reduction <add>, %91, %cst_29 [1, 2] : vector<1x32x4xf32> to vector<1xf32>
    %93 = vector.shape_cast %92 : vector<1xf32> to vector<1x1x1xf32>
    %94 = vector.extract %93[0, 0, 0] : f32 from vector<1x1x1xf32>
    %95 = vector.broadcast %94 : f32 to vector<1x8x128xf32>
    %c0_30 = arith.constant 0 : index
    %c0_31 = arith.constant 0 : index
    %c0_32 = arith.constant 0 : index
    %96 = vector.load %arg4[%c0_30, %c0_31, %c0_32] : memref<1x8x128xf32, #tpu.memory_space<vmem>>, vector<1x8x128xf32>
    tpu.vector_store %arg4[%c0_30, %c0_31, %c0_32], %95 {strides = array<i32>} : memref<1x8x128xf32, #tpu.memory_space<vmem>>, vector<1x8x128xf32>,
    return
  }
  func.func @transform_0(%arg0: i32) -> (i32, i32) {
    %c0_i32 = arith.constant 0 : i32
    %c0_i32_0 = arith.constant 0 : i32
    return %arg0, %c0_i32 : i32, i32
  }
  func.func @transform_1(%arg0: i32) -> (i32, i32) {
    %c0_i32 = arith.constant 0 : i32
    %c0_i32_0 = arith.constant 0 : i32
    return %arg0, %c0_i32 : i32, i32
  }
  func.func @transform_2(%arg0: i32) -> (i32, i32) {
    %c0_i32 = arith.constant 0 : i32
    %c0_i32_0 = arith.constant 0 : i32
    return %arg0, %c0_i32 : i32, i32
  }
  func.func @transform_3(%arg0: i32) -> (i32, i32, i32) {
    %c0_i32 = arith.constant 0 : i32
    %c0_i32_0 = arith.constant 0 : i32
    %c0_i32_1 = arith.constant 0 : i32
    return %arg0, %c0_i32, %c0_i32_0 : i32, i32, i32
  }
}

</mosaic_0001>

<bundles_post_ra>
// kernel: tpu_custom_call.1
= control target key start
LH: loop header
LB: loop body
LE: loop exit
PB: predicated region body
PF: predicated region fallthrough
CT: control target
= control target key end

     0   :  { %s1974_s0 = inlined_call_operand.hbm [shape: f32[64,128], index: 0, kind: input, shape index: {}]   ;;  %s1975_s1 = inlined_call_operand.hbm [shape: f32[64,128], index: 1, kind: input, shape index: {}]   ;;  %s1976_s2 = inlined_call_operand.hbm [shape: f32[64,128], index: 2, kind: input, shape index: {}]   ;;  %s1977_s3 = inlined_call_operand.hbm [shape: f32[2,8,128], index: 3, kind: output, shape index: {}]  }
   0x1   :  { %1984 = sst [smem:[#allocation12_spill]] %s1974_s0 }
   0x2   :  { %1985 = sst [smem:[#allocation13_spill]] %s1975_s1 }
   0x3   :  { %8 = vsyncpa [#allocation3], 0 }
   0x4   :  { %10 = vsyncpa [#allocation3 + $0x1], 0 }
   0x5   :  { %11 = vsyncpa [#allocation6], 0 }
   0x6   :  { %13 = vsyncpa [#allocation6 + $0x1], 0 }
   0x7   :  { %14 = vsyncpa [#allocation4], 0 }
   0x8   :  { %16 = vsyncpa [#allocation4 + $0x1], 0  ;;  %s1297_s12 = smov 0   ;;  %s1299_s13 = smov 0  }
   0x9   :  { %s1301_s14 = smov 0   ;;  %s1303_s15 = smov 0  }
   0xa LB: > { %s1318_s16 = sadd.s32 4294967295, %s1266_s15   ;;  %s1003_s17 = sadd.s32 4294967294, %s1266_s15   ;;  %s1266_s15 = sphi %s1303_s15, %s2005_s15   ;;  %s1262_s14 = sphi %s1301_s14, %s2004_s14   ;;  %s1258_s13 = sphi %s1299_s13, %s2003_s13   ;;  %s1254_s12 = sphi %s1297_s12, %s2002_s12  }
   0xb   : > { %s1322_s18 = sadd.s32 1, %s1266_s15   ;;  %s29_s19 = sadd.s32 1, %s1262_s14 }
   0xc   : > { %s26_s20 = ssub.s32 %s1266_s15, %s1322_s18  ;;  %p36_p0 = scmp.ne.s32.totalorder %s1262_s14, %s1258_s13 }
   0xd   : > { %p27_p1 = scmp.eq.s32.totalorder %s26_s20, 0  ;;  %p37_p2 = scmp.eq.s32.totalorder %s1266_s15, 0 }
   0xe   : > { %p42_p3 = scmp.ne.s32.totalorder %s1258_s13, %s1254_s12  ;;  %p43_p4 = scmp.eq.s32.totalorder %s1318_s16, 0 }
   0xf   : > { %s1334_s21 = scalar_select %p27_p1, %s1262_s14, %s29_s19  }
  0x10   : > { %p38_p5 = por %p37_p2, %p36_p0  ;;  %p1336_p6 = por %p43_p4, %p42_p3 }
  0x11   : > { %p118_p7 = scmp.eq.s32.totalorder %s1318_s16, 1  ;;  %p124_p8 = scmp.eq.s32.totalorder %s1003_s17, 1 }
  0x12   : > { %s1986_s22 = scalar_select %p1336_p6, 1, 0 }
  0x13   : > { %p1051_p10 = scmp.lt.s32.totalorder %s1266_s15, 2  ;;  %p1343_p11 = por %p118_p7, %p36_p0 }
  0x14   : > { %p1347_p12 = por %p124_p8, %p42_p3  ;;  %s144_s25 = sand.u32 1, %s1262_s14  }
  0x15   : > { %s1987_s23 = scalar_select %p1343_p11, 1, 0 }
  0x16   : > { %s1988_s24 = scalar_select %p1347_p12, 1, 0 }
  0x17   : > { %s1353_s26 = sshll.u32 %s1266_s15, 9  ;;  %s1357_s27 = sshll.u32 %s144_s25, 5 }
  0x18   : > { %p1359_p13 = pnand %p1051_p10, %p38_p5  ;;  %s165_s29 = sand.u32 1, %s1266_s15  }
  0x19   : > { %s1990_s1 = sld [smem:[#allocation13_spill]]  ;;  %s169_s6 = scalar_lea.vmem [#allocation5], %s1357_s27 }
  0x1a   : > { %s176_s7 = sshll.u32 %s169_s6, 4  ;;  %s1374_s8 = scalar_lea.sflag [#allocation6], %s165_s29  ;;  %s1371_s7 = int_to_ptr.vmem [resolvable:$true] %s176_s7 }
  0x1b   : > { %p1380_p2 = pneg %p1359_p13 }
  0x1f   : > { %s1368_s5 = scalar_lea.hbm %s1990_s1, %s1353_s26  ;;  %s1119_s19 = scalar_lea.hbm %s1990_s1, 1024 }
  0x20   : > { %s1114_s9 = scalar_lea.hbm %s1368_s5, 512  ;;  %p1120_p5 = scmp.lt.s32.totalorder %s1368_s5, %s1990_s1 }
  0x21   : > { %p1115_p1 = scmp.ne.s32.totalorder %s1368_s5, %s1114_s9  ;;  %p1121_p7 = scmp.lt.s32.totalorder %s1119_s19, %s1114_s9 }
  0x23   : > { %p1117_p3 = pnand %p1380_p2, %p1115_p1  ;;  %p1122_p8 = por %p1121_p7, %p1120_p5 }
  0x25   : > { %p1118_p4 = pneg %p1117_p3 }
  0x27   : > { %p1123_p10 = pnand %p1122_p8, %p1118_p4 }
  0x29   : > { %1126 = shalt.err (!%p1123_p10)
}
  0x2a   : > { %s1127_s29 = scalar_lea.vmem %s1371_s7, 512  ;;  %s1268_s4 = smov [#allocation5]  }
  0x2b   : > { %p1128_p9 = scmp.ne.s32.totalorder %s1371_s7, %s1127_s29  ;;  %s1132_s6 = sshll.u32 %s1268_s4, 4  ;;  %s1133_s6 = int_to_ptr.vmem [resolvable:$false] %s1132_s6 }
  0x2c   : > { %s1134_s11 = scalar_lea.vmem %s1133_s6, 1024  ;;  %p1135_p0 = scmp.lt.s32.totalorder %s1371_s7, %s1133_s6 }
  0x2d   : > { %p1130_p1 = pnand %p1128_p9, %p1380_p2  ;;  %p1136_p12 = scmp.lt.s32.totalorder %s1134_s11, %s1127_s29 }
  0x2f   : > { %p1131_p3 = pneg %p1130_p1  ;;  %p1137_p11 = por %p1136_p12, %p1135_p0 }
  0x31   : > { %p1138_p6 = pnand %p1137_p11, %p1131_p3 }
  0x33   : > { %1141 = shalt.err (!%p1138_p6)
}
  0x34   : > { %s1980_s9 = smov 128   ;;  %s1982_s17 = smov 8  }
  0x35   : > { %1043 = dma.hbm_to_vmem [thread:$0]  (!%p1359_p13), %s1368_s5, 512, %s1371_s7, %s1374_s8, %s1980_s9, %s1980_s9, %s1982_s17  }
  0x36   : > { %p205_p9 = scmp.lt.s32.totalorder %s1266_s15, 3  ;;  %s1992_s0 = sld [smem:[#allocation12_spill]] }
  0x37   : > { %p1993_p6 = scmp.ge.s32.totalorder %s1266_s15, 1  ;;  %s148_s4 = scalar_lea.vmem [#allocation2], %s1357_s27 }
  0x38   : > { %s155_s6 = sshll.u32 %s148_s4, 4  ;;  %s145_s5 = scalar_lea.sflag [#allocation3], %s144_s25  ;;  %s1420_s6 = int_to_ptr.vmem [resolvable:$true] %s155_s6 }
  0x39   : > { %p1415_p11 = pnand %p1993_p6, %p205_p9 }
  0x3b   : > { %s1994_s29 = scalar_select %p1415_p11, 1, 0 }
  0x3c   : > { %s1411_s30 = scalar_lea.hbm %s1992_s0, %s1353_s26  ;;  %s1147_s20 = scalar_lea.hbm %s1992_s0, 1024 }
  0x3d   : > { %s1142_s7 = scalar_lea.hbm %s1411_s30, 512  ;;  %p1148_p5 = scmp.lt.s32.totalorder %s1411_s30, %s1992_s0 }
  0x3e   : > { %p1143_p12 = scmp.ne.s32.totalorder %s1411_s30, %s1142_s7  ;;  %p1149_p7 = scmp.lt.s32.totalorder %s1147_s20, %s1142_s7 }
  0x40   : > { %p1145_p0 = pnand %p1143_p12, %p1380_p2  ;;  %p1150_p8 = por %p1149_p7, %p1148_p5 }
  0x42   : > { %p1146_p4 = pneg %p1145_p0 }
  0x44   : > { %p1151_p10 = pnand %p1150_p8, %p1146_p4 }
  0x46   : > { %1154 = shalt.err (!%p1151_p10)
}
  0x47   : > { %s1155_s25 = scalar_lea.vmem %s1420_s6, 512  ;;  %s1271_s4 = smov [#allocation2]  }
  0x48   : > { %p1156_p1 = scmp.ne.s32.totalorder %s1420_s6, %s1155_s25  ;;  %s1160_s11 = sshll.u32 %s1271_s4, 4  ;;  %s1161_s11 = int_to_ptr.vmem [resolvable:$false] %s1160_s11 }
  0x49   : > { %s1162_s19 = scalar_lea.vmem %s1161_s11, 1024  ;;  %p1163_p6 = scmp.lt.s32.totalorder %s1420_s6, %s1161_s11 }
  0x4a   : > { %p1158_p3 = pnand %p1156_p1, %p1380_p2  ;;  %p1164_p12 = scmp.lt.s32.totalorder %s1162_s19, %s1155_s25 }
  0x4c   : > { %p1159_p9 = pneg %p1158_p3  ;;  %p1165_p0 = por %p1164_p12, %p1163_p6 }
  0x4e   : > { %p1166_p11 = pnand %p1165_p0, %p1159_p9 }
  0x50   : > { %1169 = shalt.err (!%p1166_p11)
}
  0x51   : > { %s1995_s9 = smov 8   ;;  %s1996_s17 = smov 128  }
  0x52   : > { %1040 = dma.hbm_to_vmem [thread:$0]  (!%p1359_p13), %s1411_s30, 512, %s1420_s6, %s145_s5, %s1996_s17, %s1996_s17, %s1995_s9  }
  0x53   : > { %s1451_s4 = scalar_lea.hbm %s1976_s2, %s1353_s26  ;;  %s190_s25 = scalar_lea.vmem [#allocation7], %s1357_s27 }
  0x54   : > { %s197_s11 = sshll.u32 %s190_s25, 4  ;;  %s1170_s19 = scalar_lea.hbm %s1451_s4, 512  ;;  %s198_s11 = int_to_ptr.vmem [resolvable:$true] %s197_s11 }
  0x55   : > { %p1171_p11 = scmp.ne.s32.totalorder %s1451_s4, %s1170_s19  ;;  %s1175_s30 = scalar_lea.hbm %s1976_s2, 1024 }
  0x56   : > { %p1176_p7 = scmp.lt.s32.totalorder %s1451_s4, %s1976_s2  ;;  %p1177_p8 = scmp.lt.s32.totalorder %s1175_s30, %s1170_s19 }
  0x57   : > { %p1173_p4 = pnand %p1171_p11, %p1380_p2 }
  0x58   : > { %p1178_p10 = por %p1177_p8, %p1176_p7 }
  0x59   : > { %p1174_p5 = pneg %p1173_p4 }
  0x5b   : > { %p1179_p1 = pnand %p1178_p10, %p1174_p5 }
  0x5d   : > { %1182 = shalt.err (!%p1179_p1)
}
  0x5e   : > { %s1183_s26 = scalar_lea.vmem %s198_s11, 512  ;;  %s1272_s27 = smov [#allocation7]  }
  0x5f   : > { %p1184_p3 = scmp.ne.s32.totalorder %s198_s11, %s1183_s26  ;;  %s1188_s7 = sshll.u32 %s1272_s27, 4  ;;  %s1189_s7 = int_to_ptr.vmem [resolvable:$false] %s1188_s7 }
  0x60   : > { %s1190_s20 = scalar_lea.vmem %s1189_s7, 1024  ;;  %p1191_p12 = scmp.lt.s32.totalorder %s198_s11, %s1189_s7 }
  0x61   : > { %p1186_p9 = pnand %p1184_p3, %p1380_p2  ;;  %p1192_p0 = scmp.lt.s32.totalorder %s1190_s20, %s1183_s26 }
  0x63   : > { %p1187_p6 = pneg %p1186_p9  ;;  %p1193_p11 = por %p1192_p0, %p1191_p12 }
  0x65   : > { %p1194_p4 = pnand %p1193_p11, %p1187_p6 }
  0x67   : > { %1197 = shalt.err (!%p1194_p4)
}
  0x68   : > { %1046 = dma.hbm_to_vmem [thread:$0]  (!%p1359_p13), %s1451_s4, 512, %s198_s11, %s1374_s8, %s1996_s17, %s1996_s17, %s1995_s9  }
  0x69   : > { %p1997_p2 = scmp.ne.s32.totalorder %s1994_s29, 0 }
  0x6a   : > { %s1477_s0 = sand.u32 (!%p1997_p2), 1, %s1258_s13   ;;  %p1998_p5 = scmp.ne.s32.totalorder (!%p1997_p2), %s1986_s22, 0 }
  0x6b   : > { %209 = sbr.rel (%p1997_p2) target bundleno = 1775 (0x6ef), region = 32  ;;  %s1480_s1 = sshll.u32 (!%p1997_p2), %s1477_s0, 5 }
  0x6c   : > { %s212_s10 = scalar_lea.sflag (!%p1997_p2), [#allocation3], %s1477_s0  ;;  %s215_s28 = scalar_lea.vmem (!%p1997_p2), [#allocation2], %s1480_s1 }
  0x70   : > { %1241 = dma.done.wait (%p1998_p5), %s212_s10, 512  }
  0x71   : > { %1243 = vsyncadd (%p1998_p5), %s212_s10, 4294966784  ;;  %s220_s8 = sand.u32 1, %s1318_s16   ;;  %s224_s9 = scalar_lea.vmem [#allocation5], %s1480_s1 }
  0x72   : > { %s221_s29 = scalar_lea.sflag [#allocation6], %s220_s8 }
  0x73   : > { %1245 = dma.done.wait (%p1998_p5), %s221_s29, 1024  }
  0x74   : > { %1247 = vsyncadd (%p1998_p5), %s221_s29, 4294966272  ;;  %v1494_v0 = vld [vmem:[%s215_s28 + $0x10] sm:$0xff]  ;;  %vm285_vm0 = vcmask 261120   ;;  %v1498_v2 = vld [vmem:[%s215_s28] sm:$0xff]  ;;  %s1273_s22 = smov 96   ;;  %s1274_s17 = smov 64  }
  0x75   : > { %v1496_v1 = vld [vmem:[%s224_s9 + $0x10] sm:$0xff]  ;;  %v1502_v4 = vld [vmem:[%s224_s9] sm:$0xff]  ;;  %v1504_v5 = vld [vmem:[%s215_s28 + $0x18] sm:$0xff]  ;;  %s1275_s4 = smov 32   ;;  %s233_s25 = scalar_lea.vmem [#allocation7], %s1480_s1  ;;  %vm374_vm1 = vcmask 7168  }
  0x76   : > { %v283_v3 = vmul.f32 %v1496_v1, %v1494_v0  ;;  %v1506_v6 = vld [vmem:[%s224_s9 + $0x18] sm:$0xff]  ;;  %v281_v7 = vmul.f32 %v1502_v4, %v1498_v2  ;;  %v1512_v9 = vld [vmem:[%s215_s28 + $0x8] sm:$0xff]  ;;  %v1580_v57 = vld [vmem:[%s233_s25] sm:$0xff]  ;;  %vm379_vm2 = vcmask 15360   ;;  %vm384_vm3 = vcmask 23552   ;;  %s1019_s11 = sshll.u32 %s1477_s0, 3 }
  0x77   : > { %v284_v8 = vmul.f32 %v1506_v6, %v1504_v5  ;;  %v1514_v10 = vld [vmem:[%s224_s9 + $0x8] sm:$0xff]  ;;  %v1567_v45 = vld [vmem:[%s233_s25 + $0x18] sm:$0xff]  ;;  %v389_v59 = vmul.f32 %v1580_v57, %v1498_v2  ;;  %v1585_v60 = vld [vmem:[%s233_s25 + $0x10] sm:$0xff]  ;;  %vm857_vm4 = vcmask 31744   ;;  %s265_s19 = scalar_lea.vmem [#allocation8], %s1019_s11  ;;  %s1021_s6 = sshll.u32 %s1318_s16, 7 }
  0x78   : > { %v292_v11 = vsel %vm285_vm0, %v283_v3, 0.0  ;;  %v282_v12 = vmul.f32 %v1514_v10, %v1512_v9  ;;  %v286_v13 = vsel %vm285_vm0, %v281_v7, 0.0  ;;  %v1561_v41 = vld [vmem:[%s233_s25 + $0x8] sm:$0xff]  ;;  %v392_v49 = vmul.f32 %v1567_v45, %v1504_v5  ;;  %s890_s30 = sshll.u32 %s265_s19, 4  ;;  %s888_s7 = scalar_lea.hbm %s1977_s3, %s1021_s6  ;;  %s1934_s30 = int_to_ptr.vmem [resolvable:$true] %s890_s30 }
  0x79   : > { %293 = vadd.xlane.f32.xlu1 %v292_v11  ;;  %287 = vadd.xlane.f32.xlu0 %v286_v13  ;;  %v295_v14 = vsel %vm285_vm0, %v284_v8, 0.0  ;;  %v390_v43 = vmul.f32 %v1561_v41, %v1512_v9  ;;  %v393_v61 = vsel %vm285_vm0, %v389_v59, 0.0  ;;  %v391_v62 = vmul.f32 %v1585_v60, %v1494_v0  ;;  %s877_s20 = scalar_lea.sflag [#allocation4], %s1477_s0  ;;  %s1198_s1 = scalar_lea.vmem %s1934_s30, 128 }
  0x7a   : > { %v289_v15 = vsel %vm285_vm0, %v282_v12, 0.0  ;;  %v402_v51 = vsel %vm285_vm0, %v392_v49, 0.0  ;;  %p1199_p13 = scmp.ne.s32.totalorder %s1934_s30, %s1198_s1  ;;  %p1999_p7 = scmp.ne.s32.totalorder %s1987_s23, 0 }
  0x7b   : > { %v396_v48 = vsel %vm285_vm0, %v390_v43, 0.0  ;;  %v399_v63 = vsel %vm285_vm0, %v391_v62, 0.0  ;;  %s1276_s10 = smov [#allocation8]  }
  0x7c   : > { %p1200_p8 = pnand %p1199_p13, %p1999_p7  ;;  %s1202_s16 = sshll.u32 %s1276_s10, 4  ;;  %s1203_s16 = int_to_ptr.vmem [resolvable:$false] %s1202_s16 }
  0x7d   : > { %296 = vadd.xlane.f32.xlu1 %v295_v14  ;;  %290 = vadd.xlane.f32.xlu0 %v289_v15  ;;  %s1204_s28 = scalar_lea.vmem %s1203_s16, 256  ;;  %p1205_p1 = scmp.lt.s32.totalorder %s1934_s30, %s1203_s16 }
  0x7e   : > { %p1201_p10 = pneg %p1200_p8  ;;  %p1206_p3 = scmp.lt.s32.totalorder %s1204_s28, %s1198_s1 }
  0x80   : > { %p1207_p9 = por %p1206_p3, %p1205_p1 }
  0x82   : > { %p1208_p6 = pnand %p1207_p9, %p1201_p10 }
  0x8e   : > { %304 = vrot.lane.b32.xlu1 %v282_v12, %s1273_s22 }
  0x92   : > { %306 = vrot.lane.b32.xlu1 %v283_v3, %s1273_s22 }
  0x93   : > { %302 = vrot.lane.b32.xlu0 %v281_v7, %s1273_s22 }
  0x96   : > { %308 = vrot.lane.b32.xlu1 %v284_v8, %s1273_s22 }
  0x97   : > { %326 = vrot.lane.b32.xlu0 %v281_v7, %s1274_s17 }
  0x9a   : > { %328 = vrot.lane.b32.xlu1 %v282_v12, %s1274_s17 }
  0x9e   : > { %330 = vrot.lane.b32.xlu1 %v283_v3, %s1274_s17 }
  0xa2   : > { %332 = vrot.lane.b32.xlu1 %v284_v8, %s1274_s17 }
 0x102   : > { %v1530_v16 = vpop.xlane.xlu1 %293  ;;  %v1532_v17 = vpop.xlane.xlu0 %287 }
 0x106   : > { %v1534_v18 = vpop.xlane.xlu1 %296  ;;  %v1536_v19 = vpop.xlane.xlu0 %290 }
 0x10a   : > { %v305_v20 = vpop.permute.xlu1 %304  ;;  %v303_v21 = vpop.permute.xlu0 %302 }
 0x10b   : > { %v317_v22 = vsel %vm285_vm0, %v305_v20, 0.0  ;;  %v314_v23 = vsel %vm285_vm0, %v303_v21, 0.0 }
 0x10c   : > { %318 = vadd.xlane.f32.xlu1 %v317_v22  ;;  %315 = vadd.xlane.f32.xlu0 %v314_v23 }
 0x10e   : > { %v307_v24 = vpop.permute.xlu1 %306  ;;  %v327_v28 = vpop.permute.xlu0 %326 }
 0x10f   : > { %v320_v25 = vsel %vm285_vm0, %v307_v24, 0.0  ;;  %v338_v30 = vsel %vm285_vm0, %v327_v28, 0.0 }
 0x110   : > { %321 = vadd.xlane.f32.xlu0 %v320_v25 }
 0x112   : > { %v309_v26 = vpop.permute.xlu1 %308 }
 0x113   : > { %v323_v27 = vsel %vm285_vm0, %v309_v26, 0.0 }
 0x114   : > { %324 = vadd.xlane.f32.xlu0 %v323_v27 }
 0x116   : > { %v329_v29 = vpop.permute.xlu1 %328 }
 0x117   : > { %v341_v31 = vsel %vm285_vm0, %v329_v29, 0.0 }
 0x118   : > { %342 = vadd.xlane.f32.xlu1 %v341_v31  ;;  %339 = vadd.xlane.f32.xlu0 %v338_v30 }
 0x11a   : > { %v331_v32 = vpop.permute.xlu1 %330 }
 0x11b   : > { %v344_v33 = vsel %vm285_vm0, %v331_v32, 0.0 }
 0x11c   : > { %345 = vadd.xlane.f32.xlu0 %v344_v33 }
 0x11e   : > { %v333_v34 = vpop.permute.xlu1 %332 }
 0x11f   : > { %v347_v35 = vsel %vm285_vm0, %v333_v34, 0.0 }
 0x120   : > { %348 = vadd.xlane.f32.xlu0 %v347_v35 }
 0x129   : > { %352 = vrot.lane.b32.xlu1 %v282_v12, %s1275_s4 }
 0x12d   : > { %354 = vrot.lane.b32.xlu1 %v283_v3, %s1275_s4 }
 0x131   : > { %356 = vrot.lane.b32.xlu1 %v284_v8, %s1275_s4 }
 0x136   : > { %350 = vrot.lane.b32.xlu0 %v281_v7, %s1275_s4 }
 0x195   : > { %v1550_v36 = vpop.xlane.xlu0 %315  ;;  %v1554_v38 = vpop.xlane.xlu1 %318 }
 0x199   : > { %v1552_v37 = vpop.xlane.xlu0 %321 }
 0x19d   : > { %v1556_v39 = vpop.xlane.xlu0 %324 }
 0x1a1   : > { %v1558_v40 = vpop.xlane.xlu1 %342  ;;  %v1563_v42 = vpop.xlane.xlu0 %339 }
 0x1a5   : > { %v353_v44 = vpop.permute.xlu1 %352  ;;  %v1569_v46 = vpop.xlane.xlu0 %345 }
 0x1a6   : > { %v365_v47 = vsel %vm285_vm0, %v353_v44, 0.0 }
 0x1a7   : > { %366 = vadd.xlane.f32.xlu1 %v365_v47 }
 0x1a9   : > { %v1575_v50 = vpop.xlane.xlu0 %348  ;;  %v355_v52 = vpop.permute.xlu1 %354 }
 0x1aa   : > { %v368_v55 = vsel %vm285_vm0, %v355_v52, 0.0  ;;  %v494_v52 = vmul.f32 %v1512_v9, %v1512_v9 }
 0x1ab   : > { %397 = vadd.xlane.f32.xlu1 %v396_v48 }
 0x1ad   : > { %v351_v53 = vpop.permute.xlu0 %350  ;;  %v357_v56 = vpop.permute.xlu1 %356 }
 0x1ae   : > { %v362_v54 = vsel %vm285_vm0, %v351_v53, 0.0  ;;  %v371_v58 = vsel %vm285_vm0, %v357_v56, 0.0 }
 0x1af   : > { %403 = vadd.xlane.f32.xlu1 %v402_v51  ;;  %363 = vadd.xlane.f32.xlu0 %v362_v54 }
 0x1b3   : > { %369 = vadd.xlane.f32.xlu0 %v368_v55  ;;  %v1631_v55 = vmul.f32 %v1504_v5, %v1504_v5 }
 0x1b5   : > { %v506_v56 = vsel %vm285_vm0, %v1631_v55, 0.0 }
 0x1b7   : > { %372 = vadd.xlane.f32.xlu0 %v371_v58 }
 0x1bb   : > { %394 = vadd.xlane.f32.xlu0 %v393_v61 }
 0x1bf   : > { %400 = vadd.xlane.f32.xlu0 %v399_v63 }
 0x1c0   : > { %411 = vrot.lane.b32.xlu1 %v390_v43, %s1273_s22 }
 0x1c4   : > { %413 = vrot.lane.b32.xlu1 %v391_v62, %s1273_s22 }
 0x1c8   : > { %415 = vrot.lane.b32.xlu1 %v392_v49, %s1273_s22 }
 0x1d5   : > { %409 = vrot.lane.b32.xlu0 %v389_v59, %s1273_s22 }
 0x230   : > { %v1595_v3 = vpop.xlane.xlu1 %366 }
 0x234   : > { %v1597_v7 = vpop.xlane.xlu1 %397 }
 0x238   : > { %v404_v8 = vpop.xlane.xlu1 %403  ;;  %v1599_v11 = vpop.xlane.xlu0 %363 }
 0x23c   : > { %v412_v12 = vpop.permute.xlu1 %411  ;;  %v1601_v13 = vpop.xlane.xlu0 %369 }
 0x23d   : > { %v424_v14 = vsel %vm285_vm0, %v412_v12, 0.0 }
 0x23e   : > { %425 = vadd.xlane.f32.xlu1 %v424_v14  ;;  %v495_v14 = vmul.f32 %v1494_v0, %v1494_v0  ;;  %v493_v0 = vmul.f32 %v1498_v2, %v1498_v2 }
 0x240   : > { %v1604_v15 = vpop.xlane.xlu0 %372  ;;  %v414_v22 = vpop.permute.xlu1 %413 }
 0x241   : > { %v427_v25 = vsel %vm285_vm0, %v414_v22, 0.0 }
 0x244   : > { %v395_v20 = vpop.xlane.xlu0 %394  ;;  %v416_v26 = vpop.permute.xlu1 %415 }
 0x245   : > { %v430_v27 = vsel %vm285_vm0, %v416_v26, 0.0  ;;  %v497_v26 = vsel %vm285_vm0, %v493_v0, 0.0 }
 0x248   : > { %v401_v21 = vpop.xlane.xlu0 %400 }
 0x24c   : > { %v410_v23 = vpop.permute.xlu0 %409 }
 0x24d   : > { %v421_v24 = vsel %vm285_vm0, %v410_v23, 0.0 }
 0x24e   : > { %422 = vadd.xlane.f32.xlu0 %v421_v24 }
 0x24f   : > { %435 = vrot.lane.b32.xlu1 %v390_v43, %s1274_s17 }
 0x252   : > { %428 = vadd.xlane.f32.xlu0 %v427_v25 }
 0x253   : > { %437 = vrot.lane.b32.xlu1 %v391_v62, %s1274_s17 }
 0x256   : > { %431 = vadd.xlane.f32.xlu0 %v430_v27  ;;  %v503_v27 = vsel %vm285_vm0, %v495_v14, 0.0 }
 0x257   : > { %439 = vrot.lane.b32.xlu1 %v392_v49, %s1274_s17 }
 0x26c   : > { %433 = vrot.lane.b32.xlu0 %v389_v59, %s1274_s17 }
 0x2c7   : > { %v1613_v28 = vpop.xlane.xlu1 %425 }
 0x2cb   : > { %v436_v29 = vpop.permute.xlu1 %435 }
 0x2cc   : > { %v448_v30 = vsel %vm285_vm0, %v436_v29, 0.0 }
 0x2cd   : > { %449 = vadd.xlane.f32.xlu1 %v448_v30 }
 0x2cf   : > { %v438_v34 = vpop.permute.xlu1 %437 }
 0x2d0   : > { %v451_v47 = vsel %vm285_vm0, %v438_v34, 0.0 }
 0x2d3   : > { %v440_v48 = vpop.permute.xlu1 %439 }
 0x2d4   : > { %v454_v51 = vsel %vm285_vm0, %v440_v48, 0.0 }
 0x2d7   : > { %v423_v31 = vpop.xlane.xlu0 %422 }
 0x2d8   : > { %v481_v58 = vsel %vm374_vm1, %v395_v20, %v423_v31 }
 0x2db   : > { %v429_v32 = vpop.xlane.xlu0 %428 }
 0x2dc   : > { %v483_v61 = vsel %vm374_vm1, %v401_v21, %v429_v32 }
 0x2de   : > { %459 = vrot.lane.b32.xlu1 %v390_v43, %s1275_s4 }
 0x2df   : > { %v432_v33 = vpop.xlane.xlu0 %431 }
 0x2e0   : > { %v484_v5 = vsel %vm374_vm1, %v404_v8, %v432_v33 }
 0x2e2   : > { %461 = vrot.lane.b32.xlu1 %v391_v62, %s1275_s4 }
 0x2e3   : > { %v434_v35 = vpop.permute.xlu0 %433 }
 0x2e4   : > { %v445_v44 = vsel %vm285_vm0, %v434_v35, 0.0 }
 0x2e5   : > { %446 = vadd.xlane.f32.xlu0 %v445_v44 }
 0x2e6   : > { %463 = vrot.lane.b32.xlu1 %v392_v49, %s1275_s4  ;;  %v500_v49 = vsel %vm285_vm0, %v494_v52, 0.0 }
 0x2e9   : > { %452 = vadd.xlane.f32.xlu0 %v451_v47 }
 0x2ed   : > { %455 = vadd.xlane.f32.xlu0 %v454_v51 }
 0x303   : > { %457 = vrot.lane.b32.xlu0 %v389_v59, %s1275_s4 }
 0x356   : > { %v1623_v43 = vpop.xlane.xlu1 %449 }
 0x35a   : > { %v460_v53 = vpop.permute.xlu1 %459 }
 0x35b   : > { %v472_v54 = vsel %vm285_vm0, %v460_v53, 0.0  ;;  %v1681_v53 = vmul.f32 %v1502_v4, %v1502_v4 }
 0x35c   : > { %473 = vadd.xlane.f32.xlu1 %v472_v54 }
 0x35e   : > { %v462_v23 = vpop.permute.xlu1 %461 }
 0x35f   : > { %v475_v21 = vsel %vm285_vm0, %v462_v23, 0.0 }
 0x360   : > { %501 = vadd.xlane.f32.xlu1 %v500_v49 }
 0x362   : > { %v464_v25 = vpop.permute.xlu1 %463 }
 0x363   : > { %v478_v8 = vsel %vm285_vm0, %v464_v25, 0.0 }
 0x364   : > { %507 = vadd.xlane.f32.xlu1 %v506_v56  ;;  %v598_v56 = vmul.f32 %v1514_v10, %v1514_v10  ;;  %v1702_v10 = vmul.f32 %v1580_v57, %v1580_v57  ;;  %v1743_v57 = vmul.f32 %v1567_v45, %v1567_v45 }
 0x36e   : > { %v447_v9 = vpop.xlane.xlu0 %446 }
 0x36f   : > { %v485_v59 = vsel %vm379_vm2, %v481_v58, %v447_v9 }
 0x372   : > { %v453_v62 = vpop.xlane.xlu0 %452 }
 0x373   : > { %v487_v63 = vsel %vm379_vm2, %v483_v61, %v453_v62  ;;  %v1708_v61 = vmul.f32 %v1561_v41, %v1561_v41  ;;  %v1714_v62 = vmul.f32 %v1496_v1, %v1496_v1  ;;  %v1729_v1 = vmul.f32 %v1506_v6, %v1506_v6 }
 0x374   : > { %v1737_v41 = vmul.f32 %v1585_v60, %v1585_v60 }
 0x375   : > { %515 = vrot.lane.b32.xlu1 %v494_v52, %s1273_s22 }
 0x376   : > { %v456_v12 = vpop.xlane.xlu0 %455 }
 0x377   : > { %v488_v22 = vsel %vm379_vm2, %v484_v5, %v456_v12 }
 0x379   : > { %517 = vrot.lane.b32.xlu1 %v495_v14, %s1273_s22 }
 0x37a   : > { %v458_v20 = vpop.permute.xlu0 %457 }
 0x37b   : > { %v469_v24 = vsel %vm285_vm0, %v458_v20, 0.0 }
 0x37c   : > { %470 = vadd.xlane.f32.xlu0 %v469_v24 }
 0x37d   : > { %519 = vrot.lane.b32.xlu1 %v1631_v55, %s1273_s22 }
 0x380   : > { %476 = vadd.xlane.f32.xlu0 %v475_v21 }
 0x384   : > { %479 = vadd.xlane.f32.xlu0 %v478_v8 }
 0x388   : > { %498 = vadd.xlane.f32.xlu0 %v497_v26 }
 0x38c   : > { %504 = vadd.xlane.f32.xlu0 %v503_v27 }
 0x3a2   : > { %513 = vrot.lane.b32.xlu0 %v493_v0, %s1273_s22 }
 0x3e5   : > { %v1655_v29 = vpop.xlane.xlu1 %473 }
 0x3e9   : > { %v1657_v30 = vpop.xlane.xlu1 %501 }
 0x3ed   : > { %v1659_v31 = vpop.xlane.xlu1 %507 }
 0x3f1   : > { %v516_v32 = vpop.permute.xlu1 %515 }
 0x3f2   : > { %v528_v33 = vsel %vm285_vm0, %v516_v32, 0.0 }
 0x3f3   : > { %529 = vadd.xlane.f32.xlu1 %v528_v33 }
 0x3f5   : > { %v518_v49 = vpop.permute.xlu1 %517 }
 0x404   : > { %539 = vrot.lane.b32.xlu1 %v494_v52, %s1274_s17 }
 0x405   : > { %v471_v2 = vpop.xlane.xlu0 %470 }
 0x406   : > { %v1664_v34 = vsel %vm384_vm3, %v485_v59, %v471_v2  ;;  %v520_v59 = vpop.permute.xlu1 %519 }
 0x407   : > { %v534_v4 = vsel %vm285_vm0, %v520_v59, 0.0  ;;  %v601_v59 = vsel %vm285_vm0, %v1681_v53, 0.0 }
 0x408   : > { %541 = vrot.lane.b32.xlu1 %v495_v14, %s1274_s17 }
 0x409   : > { %v477_v35 = vpop.xlane.xlu0 %476 }
 0x40a   : > { %v1668_v44 = vsel %vm384_vm3, %v487_v63, %v477_v35 }
 0x40c   : > { %543 = vrot.lane.b32.xlu1 %v1631_v55, %s1274_s17 }
 0x40d   : > { %v480_v47 = vpop.xlane.xlu0 %479 }
 0x40e   : > { %v1673_v48 = vsel %vm384_vm3, %v488_v22, %v480_v47 }
 0x410   : > { %561 = vrot.lane.b32.xlu1 %v493_v0, %s1275_s4 }
 0x411   : > { %v1676_v51 = vpop.xlane.xlu0 %498 }
 0x414   : > { %563 = vrot.lane.b32.xlu1 %v494_v52, %s1275_s4  ;;  %v531_v52 = vsel %vm285_vm0, %v518_v49, 0.0 }
 0x415   : > { %v1683_v54 = vpop.xlane.xlu0 %504 }
 0x418   : > { %617 = vrot.lane.b32.xlu1 %v1681_v53, %s1273_s22 }
 0x419   : > { %v514_v58 = vpop.permute.xlu0 %513 }
 0x41a   : > { %v525_v9 = vsel %vm285_vm0, %v514_v58, 0.0 }
 0x41b   : > { %526 = vadd.xlane.f32.xlu0 %v525_v9 }
 0x41c   : > { %619 = vrot.lane.b32.xlu1 %v598_v56, %s1273_s22 }
 0x41f   : > { %532 = vadd.xlane.f32.xlu0 %v531_v52 }
 0x420   : > { %641 = vrot.lane.b32.xlu1 %v1681_v53, %s1274_s17 }
 0x423   : > { %535 = vadd.xlane.f32.xlu0 %v534_v4 }
 0x424   : > { %643 = vrot.lane.b32.xlu1 %v598_v56, %s1274_s17 }
 0x428   : > { %565 = vrot.lane.b32.xlu1 %v495_v14, %s1275_s4  ;;  %v604_v14 = vsel %vm285_vm0, %v598_v56, 0.0 }
 0x42c   : > { %665 = vrot.lane.b32.xlu1 %v1681_v53, %s1275_s4 }
 0x430   : > { %667 = vrot.lane.b32.xlu1 %v598_v56, %s1275_s4 }
 0x434   : > { %721 = vrot.lane.b32.xlu1 %v1702_v10, %s1273_s22 }
 0x438   : > { %723 = vrot.lane.b32.xlu1 %v1708_v61, %s1273_s22 }
 0x439   : > { %537 = vrot.lane.b32.xlu0 %v493_v0, %s1274_s17 }
 0x43c   : > { %645 = vrot.lane.b32.xlu1 %v1714_v62, %s1274_s17 }
 0x440   : > { %745 = vrot.lane.b32.xlu1 %v1702_v10, %s1274_s17 }
 0x444   : > { %567 = vrot.lane.b32.xlu1 %v1631_v55, %s1275_s4 }
 0x448   : > { %669 = vrot.lane.b32.xlu1 %v1714_v62, %s1275_s4 }
 0x44c   : > { %769 = vrot.lane.b32.xlu1 %v1702_v10, %s1275_s4 }
 0x450   : > { %647 = vrot.lane.b32.xlu1 %v1729_v1, %s1274_s17 }
 0x454   : > { %671 = vrot.lane.b32.xlu1 %v1729_v1, %s1275_s4 }
 0x458   : > { %773 = vrot.lane.b32.xlu1 %v1737_v41, %s1275_s4 }
 0x45c   : > { %775 = vrot.lane.b32.xlu1 %v1743_v57, %s1275_s4 }
 0x47c   : > { %v1747_v6 = vpop.xlane.xlu1 %529 }
 0x480   : > { %v540_v55 = vpop.permute.xlu1 %539 }
 0x481   : > { %v552_v58 = vsel %vm285_vm0, %v540_v55, 0.0 }
 0x484   : > { %v542_v63 = vpop.permute.xlu1 %541 }
 0x488   : > { %v1749_v5 = vpop.permute.xlu1 %543 }
 0x48c   : > { %v562_v12 = vpop.permute.xlu1 %561 }
 0x48d   : > { %v573_v60 = vsel %vm285_vm0, %v562_v12, 0.0 }
 0x48e   : > { %574 = vadd.xlane.f32.xlu1 %v573_v60  ;;  %v555_v60 = vsel %vm285_vm0, %v542_v63, 0.0 }
 0x490   : > { %v564_v22 = vpop.permute.xlu1 %563 }
 0x491   : > { %v576_v9 = vsel %vm285_vm0, %v564_v22, 0.0  ;;  %v607_v22 = vsel %vm285_vm0, %v1714_v62, 0.0 }
 0x492   : > { %605 = vadd.xlane.f32.xlu1 %v604_v14 }
 0x494   : > { %v618_v23 = vpop.permute.xlu1 %617 }
 0x495   : > { %v629_v12 = vsel %vm285_vm0, %v618_v23, 0.0  ;;  %v705_v23 = vsel %vm285_vm0, %v1702_v10, 0.0 }
 0x498   : > { %v620_v45 = vpop.permute.xlu1 %619 }
 0x499   : > { %v632_v20 = vsel %vm285_vm0, %v620_v45, 0.0 }
 0x49a   : > { %633 = vadd.xlane.f32.xlu1 %v632_v20 }
 0x49c   : > { %v642_v24 = vpop.permute.xlu1 %641 }
 0x49d   : > { %v653_v21 = vsel %vm285_vm0, %v642_v24, 0.0 }
 0x49e   : > { %654 = vadd.xlane.f32.xlu1 %v653_v21 }
 0x4a0   : > { %v644_v25 = vpop.permute.xlu1 %643 }
 0x4a1   : > { %v656_v45 = vsel %vm285_vm0, %v644_v25, 0.0  ;;  %v558_v25 = vsel %vm285_vm0, %v1749_v5, 0.0 }
 0x4a4   : > { %v566_v8 = vpop.permute.xlu1 %565  ;;  %v527_v0 = vpop.xlane.xlu0 %526 }
 0x4a5   : > { %v579_v26 = vsel %vm285_vm0, %v566_v8, 0.0  ;;  %v585_v10 = vsel %vm374_vm1, %v1676_v51, %v527_v0 }
 0x4a6   : > { %580 = vadd.xlane.f32.xlu1 %v579_v26 }
 0x4a8   : > { %v1756_v27 = vpop.xlane.xlu0 %532  ;;  %v666_v35 = vpop.permute.xlu1 %665 }
 0x4a9   : > { %v677_v20 = vsel %vm285_vm0, %v666_v35, 0.0 }
 0x4ac   : > { %v1758_v32 = vpop.xlane.xlu0 %535  ;;  %v668_v47 = vpop.permute.xlu1 %667 }
 0x4b0   : > { %v538_v33 = vpop.permute.xlu0 %537  ;;  %v722_v49 = vpop.permute.xlu1 %721 }
 0x4b1   : > { %v549_v2 = vsel %vm285_vm0, %v538_v33, 0.0  ;;  %v733_v63 = vsel %vm285_vm0, %v722_v49, 0.0 }
 0x4b2   : > { %550 = vadd.xlane.f32.xlu0 %v549_v2 }
 0x4b4   : > { %v724_v56 = vpop.permute.xlu1 %723 }
 0x4b5   : > { %v736_v0 = vsel %vm285_vm0, %v724_v56, 0.0 }
 0x4b8   : > { %v646_v52 = vpop.permute.xlu1 %645 }
 0x4bc   : > { %v746_v4 = vpop.permute.xlu1 %745 }
 0x4c0   : > { %v568_v14 = vpop.permute.xlu1 %567 }
 0x4c1   : > { %v582_v26 = vsel %vm285_vm0, %v568_v14, 0.0 }
 0x4c4   : > { %v670_v55 = vpop.permute.xlu1 %669 }
 0x4c8   : > { %621 = vrot.lane.b32.xlu0 %v1714_v62, %s1273_s22  ;;  %v770_v53 = vpop.permute.xlu1 %769  ;;  %v757_v62 = vsel %vm285_vm0, %v746_v4, 0.0  ;;  %v680_v4 = vsel %vm285_vm0, %v668_v47, 0.0  ;;  %v659_v47 = vsel %vm285_vm0, %v646_v52, 0.0  ;;  %v610_v52 = vsel %vm285_vm0, %v1729_v1, 0.0 }
 0x4cc   : > { %747 = vrot.lane.b32.xlu0 %v1708_v61, %s1274_s17  ;;  %v648_v24 = vpop.permute.xlu1 %647 }
 0x4cd   : > { %v662_v56 = vsel %vm285_vm0, %v648_v24, 0.0 }
 0x4d0   : > { %623 = vrot.lane.b32.xlu0 %v1729_v1, %s1273_s22  ;;  %v672_v21 = vpop.permute.xlu1 %671 }
 0x4d4   : > { %725 = vrot.lane.b32.xlu0 %v1737_v41, %s1273_s22  ;;  %v774_v8 = vpop.permute.xlu1 %773 }
 0x4d8   : > { %771 = vrot.lane.b32.xlu0 %v1708_v61, %s1275_s4  ;;  %v776_v33 = vpop.permute.xlu1 %775 }
 0x4dc   : > { %749 = vrot.lane.b32.xlu0 %v1737_v41, %s1274_s17 }
 0x4e0   : > { %727 = vrot.lane.b32.xlu0 %v1743_v57, %s1273_s22 }
 0x4e4   : > { %751 = vrot.lane.b32.xlu0 %v1743_v57, %s1274_s17 }
 0x503   : > { %553 = vadd.xlane.f32.xlu0 %v552_v58 }
 0x507   : > { %577 = vadd.xlane.f32.xlu0 %v576_v9 }
 0x50b   : > { %602 = vadd.xlane.f32.xlu0 %v601_v59 }
 0x50f   : > { %630 = vadd.xlane.f32.xlu0 %v629_v12 }
 0x513   : > { %556 = vadd.xlane.f32.xlu0 %v555_v60  ;;  %v708_v60 = vsel %vm285_vm0, %v1708_v61, 0.0 }
 0x517   : > { %657 = vadd.xlane.f32.xlu0 %v656_v45  ;;  %v575_v2 = vpop.xlane.xlu1 %574  ;;  %v711_v45 = vsel %vm285_vm0, %v1737_v41, 0.0 }
 0x51b   : > { %608 = vadd.xlane.f32.xlu0 %v607_v22 }
 0x51f   : > { %678 = vadd.xlane.f32.xlu0 %v677_v20 }
 0x523   : > { %706 = vadd.xlane.f32.xlu0 %v705_v23  ;;  %v781_v23 = vsel %vm285_vm0, %v770_v53, 0.0 }
 0x527   : > { %734 = vadd.xlane.f32.xlu0 %v733_v63 }
 0x52b   : > { %559 = vadd.xlane.f32.xlu0 %v558_v25 }
 0x52f   : > { %758 = vadd.xlane.f32.xlu0 %v757_v62  ;;  %v686_v62 = vsel %vm285_vm0, %v672_v21, 0.0 }
 0x533   : > { %583 = vadd.xlane.f32.xlu0 %v582_v26 }
 0x53b   : > { %v551_v35 = vpop.xlane.xlu0 %550 }
 0x53c   : > { %v589_v49 = vsel %vm379_vm2, %v585_v10, %v551_v35  ;;  %v787_v35 = vsel %vm285_vm0, %v774_v8, 0.0 }
 0x53d   : > { %v593_v58 = vsel %vm384_vm3, %v589_v49, %v575_v2  ;;  %v790_v49 = vsel %vm285_vm0, %v776_v33, 0.0  ;;  %v587_v33 = vsel %vm374_vm1, %v1683_v54, %v1756_v27 }
 0x53e   : > { %v805_v9 = vmax.f32 %v593_v58, 1e-16  ;;  %v606_v58 = vpop.xlane.xlu1 %605 }
 0x53f   : > { %v622_v5 = vpop.permute.xlu0 %621 }
 0x540   : > { %1090 = vrsqrt.f32 %v805_v9  ;;  %v635_v59 = vsel %vm285_vm0, %v622_v5, 0.0  ;;  %v586_v9 = vsel %vm374_vm1, %v1657_v30, %v1747_v6 }
 0x541   : > { %636 = vadd.xlane.f32.xlu1 %v635_v59 }
 0x543   : > { %v748_v12 = vpop.permute.xlu0 %747 }
 0x544   : > { %v760_v41 = vsel %vm285_vm0, %v748_v12, 0.0 }
 0x545   : > { %681 = vadd.xlane.f32.xlu1 %v680_v4  ;;  %v634_v4 = vpop.xlane.xlu1 %633 }
 0x547   : > { %v624_v14 = vpop.permute.xlu0 %623 }
 0x548   : > { %v638_v51 = vsel %vm285_vm0, %v624_v14, 0.0 }
 0x549   : > { %709 = vadd.xlane.f32.xlu1 %v708_v60  ;;  %639 = vadd.xlane.f32.xlu0 %v638_v51  ;;  %v655_v8 = vpop.xlane.xlu1 %654 }
 0x54b   : > { %v726_v22 = vpop.permute.xlu0 %725 }
 0x54c   : > { %v739_v24 = vsel %vm285_vm0, %v726_v22, 0.0  ;;  %v482_v22 = vsel %vm374_vm1, %v1597_v7, %v1613_v28 }
 0x54d   : > { %v1806_v20 = vpop.eup %1090  ;;  %737 = vadd.xlane.f32.xlu1 %v736_v0  ;;  %712 = vadd.xlane.f32.xlu0 %v711_v45  ;;  %v581_v0 = vpop.xlane.xlu1 %580 }
 0x54e   : > { %v1812_v61 = vmul.f32 %v1806_v20, %v1664_v34  ;;  %v683_v34 = vsel %vm285_vm0, %v670_v55, 0.0  ;;  %v714_v55 = vsel %vm285_vm0, %v1743_v57, 0.0 }
 0x54f   : > { %v772_v63 = vpop.permute.xlu0 %771 }
 0x550   : > { %v784_v21 = vsel %vm285_vm0, %v772_v63, 0.0 }
 0x551   : > { %660 = vadd.xlane.f32.xlu1 %v659_v47  ;;  %782 = vadd.xlane.f32.xlu0 %v781_v23  ;;  %v486_v23 = vsel %vm379_vm2, %v482_v22, %v1623_v43 }
 0x553   : > { %v750_v25 = vpop.permute.xlu0 %749 }
 0x554   : > { %v763_v1 = vsel %vm285_vm0, %v750_v25, 0.0 }
 0x555   : > { %761 = vadd.xlane.f32.xlu1 %v760_v41  ;;  %663 = vadd.xlane.f32.xlu0 %v662_v56  ;;  %v490_v41 = vsel %vm384_vm3, %v486_v23, %v1655_v29  ;;  %v588_v29 = vsel %vm374_vm1, %v1659_v31, %v1758_v32 }
 0x557   : > { %v728_v53 = vpop.permute.xlu0 %727 }
 0x558   : > { %v742_v26 = vsel %vm285_vm0, %v728_v53, 0.0 }
 0x559   : > { %611 = vadd.xlane.f32.xlu1 %v610_v52  ;;  %687 = vadd.xlane.f32.xlu0 %v686_v62 }
 0x55b   : > { %v752_v2 = vpop.permute.xlu0 %751 }
 0x55c   : > { %v766_v10 = vsel %vm285_vm0, %v752_v2, 0.0 }
 0x55d   : > { %684 = vadd.xlane.f32.xlu1 %v683_v34  ;;  %743 = vadd.xlane.f32.xlu0 %v742_v26 }
 0x561   : > { %740 = vadd.xlane.f32.xlu1 %v739_v24  ;;  %767 = vadd.xlane.f32.xlu0 %v766_v10 }
 0x565   : > { %785 = vadd.xlane.f32.xlu1 %v784_v21 }
 0x569   : > { %764 = vadd.xlane.f32.xlu1 %v763_v1 }
 0x56d   : > { %715 = vadd.xlane.f32.xlu1 %v714_v55 }
 0x571   : > { %788 = vadd.xlane.f32.xlu1 %v787_v35 }
 0x575   : > { %791 = vadd.xlane.f32.xlu1 %v790_v49 }
 0x58c   : > { %v554_v5 = vpop.xlane.xlu0 %553 }
 0x58d   : > { %v590_v59 = vsel %vm379_vm2, %v586_v9, %v554_v5 }
 0x590   : > { %v578_v12 = vpop.xlane.xlu0 %577 }
 0x591   : > { %v594_v60 = vsel %vm384_vm3, %v590_v59, %v578_v12 }
 0x592   : > { %v806_v57 = vmax.f32 %v594_v60, 1e-16 }
 0x594   : > { %1092 = vrsqrt.f32 %v806_v57  ;;  %v603_v14 = vpop.xlane.xlu0 %602 }
 0x598   : > { %v631_v51 = vpop.xlane.xlu0 %630 }
 0x599   : > { %v689_v21 = vsel %vm374_vm1, %v603_v14, %v631_v51 }
 0x59c   : > { %v557_v45 = vpop.xlane.xlu0 %556 }
 0x59d   : > { %v591_v30 = vsel %vm379_vm2, %v587_v33, %v557_v45  ;;  %v375_v45 = vsel %vm374_vm1, %v1532_v17, %v1550_v36 }
 0x59e   : > { %v595_v6 = vsel %vm384_vm3, %v591_v30, %v581_v0  ;;  %v690_v0 = vsel %vm374_vm1, %v606_v58, %v634_v4  ;;  %v380_v30 = vsel %vm379_vm2, %v375_v45, %v1563_v42 }
 0x59f   : > { %v807_v47 = vmax.f32 %v595_v6, 1e-16 }
 0x5a0   : > { %v658_v63 = vpop.xlane.xlu0 %657 }
 0x5a1   : > { %v1844_v56 = vpop.eup %1092  ;;  %1094 = vrsqrt.f32 %v807_v47  ;;  %v694_v6 = vsel %vm379_vm2, %v690_v0, %v658_v63  ;;  %v385_v47 = vsel %vm384_vm3, %v380_v30, %v1599_v11 }
 0x5a2   : > { %v1849_v54 = vmul.f32 %v1844_v56, %v490_v41 }
 0x5a4   : > { %v609_v27 = vpop.xlane.xlu0 %608 }
 0x5a8   : > { %v679_v25 = vpop.xlane.xlu0 %678 }
 0x5ac   : > { %v707_v62 = vpop.xlane.xlu0 %706 }
 0x5ae   : > { %v1851_v52 = vpop.eup %1094 }
 0x5af   : > { %v1855_v7 = vmul.f32 %v1851_v52, %v1668_v44  ;;  %v693_v44 = vsel %vm379_vm2, %v689_v21, %v655_v8 }
 0x5b0   : > { %v735_v28 = vpop.xlane.xlu0 %734  ;;  %v697_v31 = vsel %vm384_vm3, %v693_v44, %v679_v25  ;;  %v829_v25 = vmul.f32 %v1806_v20, %v385_v47  ;;  %v377_v47 = vsel %vm374_vm1, %v1530_v16, %v1552_v37 }
 0x5b1   : > { %v813_v9 = vmax.f32 %v697_v31, 1e-16  ;;  %v793_v12 = vsel %vm374_vm1, %v707_v62, %v735_v28 }
 0x5b4   : > { %v560_v43 = vpop.xlane.xlu0 %559 }
 0x5b5   : > { %v592_v34 = vsel %vm379_vm2, %v588_v29, %v560_v43 }
 0x5b8   : > { %v759_v53 = vpop.xlane.xlu0 %758 }
 0x5b9   : > { %v797_v60 = vsel %vm379_vm2, %v793_v12, %v759_v53 }
 0x5bc   : > { %v584_v26 = vpop.xlane.xlu0 %583 }
 0x5bd   : > { %v596_v2 = vsel %vm384_vm3, %v592_v34, %v584_v26 }
 0x5be   : > { %v808_v24 = vmax.f32 %v596_v2, 1e-16 }
 0x5c0   : > { %1096 = vrsqrt.f32 %v808_v24 }
 0x5c1   : > { %1098 = vrsqrt.f32 %v813_v9 }
 0x5ca   : > { %v637_v10 = vpop.xlane.xlu1 %636 }
 0x5cb   : > { %v691_v29 = vsel %vm374_vm1, %v609_v27, %v637_v10  ;;  %v376_v27 = vsel %vm374_vm1, %v1536_v19, %v1554_v38 }
 0x5cc   : > { %v381_v10 = vsel %vm379_vm2, %v376_v27, %v1558_v40 }
 0x5cd   : > { %v1863_v1 = vpop.eup %1096  ;;  %v386_v12 = vsel %vm384_vm3, %v381_v10, %v1595_v3 }
 0x5ce   : > { %v682_v55 = vpop.xlane.xlu1 %681  ;;  %v1868_v35 = vmul.f32 %v1863_v1, %v1673_v48  ;;  %v1099_v22 = vpop.eup %1098 }
 0x5cf   : > { %v698_v23 = vsel %vm384_vm3, %v694_v6, %v682_v55  ;;  %v833_v4 = vmul.f32 %v1099_v22, %v829_v25 }
 0x5d0   : > { %v814_v58 = vmax.f32 %v698_v23, 1e-16  ;;  %v382_v23 = vsel %vm379_vm2, %v377_v47, %v1569_v46 }
 0x5d1   : > { %v845_v36 = vsub.f32 0.5, %v833_v4 }
 0x5d2   : > { %v710_v32 = vpop.xlane.xlu1 %709  ;;  %v640_v49 = vpop.xlane.xlu0 %639 }
 0x5d6   : > { %v738_v5 = vpop.xlane.xlu1 %737  ;;  %v713_v59 = vpop.xlane.xlu0 %712 }
 0x5d7   : > { %v794_v42 = vsel %vm374_vm1, %v710_v32, %v738_v5 }
 0x5da   : > { %v661_v57 = vpop.xlane.xlu1 %660  ;;  %v783_v14 = vpop.xlane.xlu0 %782 }
 0x5db   : > { %v801_v8 = vsel %vm384_vm3, %v797_v60, %v783_v14  ;;  %v695_v26 = vsel %vm379_vm2, %v691_v29, %v661_v57 }
 0x5dc   : > { %v821_v51 = vmax.f32 %v801_v8, 1e-16  ;;  %v830_v8 = vmul.f32 %v1844_v56, %v386_v12 }
 0x5de   : > { %1100 = vrsqrt.f32 %v821_v51  ;;  %v762_v48 = vpop.xlane.xlu1 %761  ;;  %v664_v43 = vpop.xlane.xlu0 %663 }
 0x5df   : > { %1102 = vrsqrt.f32 %v814_v58  ;;  %v798_v63 = vsel %vm379_vm2, %v794_v42, %v762_v48  ;;  %v387_v58 = vsel %vm384_vm3, %v382_v23, %v1601_v13 }
 0x5e0   : > { %v831_v4 = vmul.f32 %v1851_v52, %v387_v58 }
 0x5e2   : > { %v612_v33 = vpop.xlane.xlu1 %611  ;;  %v688_v24 = vpop.xlane.xlu0 %687 }
 0x5e3   : > { %v692_v34 = vsel %vm374_vm1, %v612_v33, %v640_v49 }
 0x5e6   : > { %v685_v41 = vpop.xlane.xlu1 %684  ;;  %v744_v32 = vpop.xlane.xlu0 %743 }
 0x5e7   : > { %v699_v21 = vsel %vm384_vm3, %v695_v26, %v685_v41 }
 0x5e8   : > { %v815_v55 = vmax.f32 %v699_v21, 1e-16 }
 0x5ea   : > { %v741_v62 = vpop.xlane.xlu1 %740  ;;  %v768_v48 = vpop.xlane.xlu0 %767 }
 0x5eb   : > { %v1101_v28 = vpop.eup %1100  ;;  %v795_v60 = vsel %vm374_vm1, %v713_v59, %v741_v62 }
 0x5ec   : > { %v841_v17 = vmul.f32 %v1101_v28, %v1812_v61  ;;  %v696_v61 = vsel %vm379_vm2, %v692_v34, %v664_v43  ;;  %v1103_v5 = vpop.eup %1102  ;;  %v378_v28 = vsel %vm374_vm1, %v1534_v18, %v1556_v39 }
 0x5ed   : > { %v700_v31 = vsel %vm384_vm3, %v696_v61, %v688_v24  ;;  %v834_v40 = vmul.f32 %v1103_v5, %v830_v8  ;;  %v383_v37 = vsel %vm379_vm2, %v378_v28, %v1575_v50 }
 0x5ee   : > { %v786_v53 = vpop.xlane.xlu1 %785  ;;  %v849_v11 = vadd.f32 %v845_v36, %v841_v17  ;;  %v816_v49 = vmax.f32 %v700_v31, 1e-16  ;;  %v388_v17 = vsel %vm384_vm3, %v383_v37, %v1604_v15 }
 0x5ef   : > { %v802_v20 = vsel %vm384_vm3, %v798_v63, %v786_v53  ;;  %v846_v6 = vsub.f32 0.5, %v834_v40  ;;  %v832_v13 = vmul.f32 %v1863_v1, %v388_v17 }
 0x5f0   : > { %v822_v2 = vmax.f32 %v802_v20, 1e-16  ;;  %v853_v22 = vmax.f32 %v849_v11, 0.0 }
 0x5f2   : > { %1104 = vrsqrt.f32 %v822_v2  ;;  %v765_v44 = vpop.xlane.xlu1 %764 }
 0x5f3   : > { %1106 = vrsqrt.f32 %v815_v55  ;;  %v799_v57 = vsel %vm379_vm2, %v795_v60, %v765_v44 }
 0x5f4   : > { %1108 = vrsqrt.f32 %v816_v49 }
 0x5f6   : > { %v716_v9 = vpop.xlane.xlu1 %715 }
 0x5f7   : > { %v796_v51 = vsel %vm374_vm1, %v716_v9, %v744_v32 }
 0x5f8   : > { %v800_v0 = vsel %vm379_vm2, %v796_v51, %v768_v48 }
 0x5fa   : > { %v789_v14 = vpop.xlane.xlu1 %788 }
 0x5fb   : > { %v803_v19 = vsel %vm384_vm3, %v799_v57, %v789_v14 }
 0x5fc   : > { %v823_v38 = vmax.f32 %v803_v19, 1e-16 }
 0x5fe   : > { %1110 = vrsqrt.f32 %v823_v38  ;;  %v792_v33 = vpop.xlane.xlu1 %791 }
 0x5ff   : > { %v1105_v3 = vpop.eup %1104  ;;  %v804_v59 = vsel %vm384_vm3, %v800_v0, %v792_v33 }
 0x600   : > { %v824_v45 = vmax.f32 %v804_v59, 1e-16  ;;  %v842_v30 = vmul.f32 %v1105_v3, %v1849_v54  ;;  %v1107_v25 = vpop.eup %1106  ;;  %v858_v54 = vsel %vm857_vm4, %v853_v22, 0.0 }
 0x601   : > { %v835_v46 = vmul.f32 %v1107_v25, %v831_v4  ;;  %v1109_v43 = vpop.eup %1108 }
 0x602   : > { %1112 = vrsqrt.f32 %v824_v45  ;;  %v850_v56 = vadd.f32 %v846_v6, %v842_v30  ;;  %v836_v36 = vmul.f32 %v1109_v43, %v832_v13 }
 0x603   : > { %v847_v63 = vsub.f32 0.5, %v835_v46 }
 0x604   : > { %v854_v41 = vmax.f32 %v850_v56, 0.0  ;;  %v848_v39 = vsub.f32 0.5, %v836_v36 }
 0x606   : > { %v859_v62 = vsel %vm857_vm4, %v854_v41, 0.0 }
 0x607   : > { %v860_v16 = vadd.f32 %v859_v62, %v858_v54 }
 0x60b   : > { %v1111_v52 = vpop.eup %1110 }
 0x60c   : > { %v843_v42 = vmul.f32 %v1111_v52, %v1855_v7 }
 0x60e   : > { %v851_v53 = vadd.f32 %v847_v63, %v843_v42 }
 0x60f   : > { %v1113_v11 = vpop.eup %1112 }
 0x610   : > { %v844_v18 = vmul.f32 %v1113_v11, %v1868_v35  ;;  %v855_v29 = vmax.f32 %v851_v53, 0.0 }
 0x612   : > { %v852_v50 = vadd.f32 %v848_v39, %v844_v18  ;;  %v861_v34 = vsel %vm857_vm4, %v855_v29, 0.0 }
 0x613   : > { %v862_v20 = vadd.f32 %v861_v34, %v860_v16 }
 0x614   : > { %v856_v15 = vmax.f32 %v852_v50, 0.0 }
 0x616   : > { %v863_v1 = vsel %vm857_vm4, %v856_v15, 0.0 }
 0x617   : > { %v864_v26 = vadd.f32 %v863_v1, %v862_v20 }
 0x619   : > { %865 = vadd.xlane.f32.xlu0 %v864_v26 }
 0x6a2   : > { %v866_v2 = vpop.xlane.xlu0 %865 }
 0x6a3   : > { %v867_v7 = vrot.slane %v866_v2, 4 }
 0x6a5   : > { %v868_v24 = vadd.f32 %v867_v7, %v866_v2 }
 0x6a7   : > { %v869_v21 = vrot.slane %v868_v24, 2 }
 0x6a9   : > { %v870_v61 = vadd.f32 %v869_v21, %v868_v24 }
 0x6ab   : > { %v871_v35 = vrot.slane %v870_v61, 1 }
 0x6ad   : > { %v872_v44 = vadd.f32 %v871_v35, %v870_v61 }
 0x6af   : > { %1027 = vpush %v872_v44 }
 0x6e0   : > { %s1028_s5 = spop %1027 }
 0x6e1   : > { %v874_v55 = vstv %s1028_s5 }
 0x6e2   : > { %875 = vst [vmem:[%s265_s19] sm:$0xff] %v874_v55 }
 0x6e3   : > { %1211 = shalt.err (!%p1208_p6)
}
 0x6e4   : > { %s1212_s8 = scalar_lea.hbm %s888_s7, 128  ;;  %s1216_s9 = scalar_lea.hbm %s1977_s3, 256 }
 0x6e5   : > { %p1213_p12 = scmp.ne.s32.totalorder %s888_s7, %s1212_s8  ;;  %p1217_p4 = scmp.lt.s32.totalorder %s888_s7, %s1977_s3 }
 0x6e6   : > { %p1218_p2 = scmp.lt.s32.totalorder %s1216_s9, %s1212_s8 }
 0x6e7   : > { %p1214_p0 = pnand %p1213_p12, %p1999_p7 }
 0x6e8   : > { %p1219_p5 = por %p1218_p2, %p1217_p4 }
 0x6e9   : > { %p1215_p11 = pneg %p1214_p0 }
 0x6eb   : > { %p1220_p13 = pnand %p1219_p5, %p1215_p11 }
 0x6ed   : > { %1223 = shalt.err (!%p1220_p13)
}
 0x6ee   : > { %1035 = dma.vmem_to_hbm [thread:$0]  (%p1999_p7), %s1934_s30, 128, %s888_s7, %s877_s20  }
 0x6ef PF: > { %s902_s4 = sand.u32 1, %s1254_s12   ;;  %p2000_p8 = scmp.ne.s32.totalorder %s1988_s24, 0 }
 0x6f0   : > { %p2001_p10 = scmp.ge.s32.totalorder %s1266_s15, 2  ;;  %s903_s25 = scalar_lea.sflag [#allocation4], %s902_s4 }
 0x6f2   : > { %p1048_p1 = pnand %p2001_p10, %p2000_p8 }
 0x6f4   : > { %p1049_p3 = pneg %p1048_p1 }
 0x6f6   : > { %1249 = dma.done.wait (%p1049_p3), %s903_s25, 128  }
 0x6f7   : > { %1251 = vsyncadd (%p1049_p3), %s903_s25, 4294967168  ;;  %p19_p9 = scmp.ge.s32.totalorder %s1322_s18, 4   ;;  %s2002_s12 = smov %s1258_s13 }
 0x6f8   : > { %s2003_s13 = smov %s1262_s14  ;;  %s2004_s14 = smov %s1334_s21 }
 0x6f9   : > { %s2005_s15 = smov %s1322_s18  ;;  %21 = sbr.rel (!%p19_p9) target bundleno = 10 (0xa), region = 101 }
 0x6fe   :  { %908 = vsyncpa [#allocation3], 1 }
 0x6ff   :  { %910 = vsyncpa [#allocation3 + $0x1], 1 }
 0x700   :  { %911 = vsyncpa [#allocation6], 1 }
 0x701   :  { %913 = vsyncpa [#allocation6 + $0x1], 1 }
 0x702   :  { %914 = vsyncpa [#allocation4], 1 }
 0x703   :  { %916 = vsyncpa [#allocation4 + $0x1], 1 }

</bundles_post_ra>
